<compile_context>
chip_gen: v6e
topology: v6e:2x2x1
jax: 0.10.0
libtpu: 0.0.40
codegen_flags: <defaults>
</compile_context>

<pallas_src>
import functools

import jax
import jax.numpy as jnp
from jax.experimental import pallas as pl
from jax.experimental.pallas import tpu as pltpu


def _mads_nwd_kernel(w_ref, k_ref, v_ref, q_ref, o_ref, *, kernel, cast_qk_bf16):
    # Block shapes per grid step:
    #   w_ref: (1, D)         k_ref: (BB, N, D)    v_ref: (BB, N, Dv)
    #   q_ref: (BB, TM, D)    o_ref: (BB, TM, Dv)
    Wb = w_ref[...][None, :, :]                    # (1, 1, D)
    K = k_ref[...] * Wb                            # (BB, N, D)   KEY   * W
    Q = q_ref[...] * Wb                            # (BB, TM, D)  QUERY * W
    V = v_ref[...]                                 # (BB, N, Dv)

    # Pairwise squared euclidean distance, (query, key) oriented:
    #   dist2[b, q, k] = ||Q_bq||^2 + ||K_bk||^2 - 2 Q_bq . K_bk
    k2 = jnp.sum(K * K, axis=-1)[:, None, :]       # (BB, 1, N)
    q2 = jnp.sum(Q * Q, axis=-1)[:, :, None]       # (BB, TM, 1)

    if cast_qk_bf16:
        Qd = Q.astype(jnp.bfloat16)
        Kd = K.astype(jnp.bfloat16)
    else:
        Qd, Kd = Q, K
    cross = jnp.einsum('bqd,bkd->bqk', Qd, Kd,
                       preferred_element_type=jnp.float32)      # (BB, TM, N) on MXU
    dist2 = jnp.maximum(q2 + k2 - 2.0 * cross, 0.0)

    if kernel == 'gauss':
        logits = dist2 * -0.5                      # -dist^2 / 2
    elif kernel == 'exp':
        logits = jnp.sqrt(dist2) * -0.5            # -dist / 2
    else:
        raise ValueError('kernel must be "gauss" or "exp"')

    # Softmax over the key axis (axis=-1 here == dim=1 of the torch (B, N, M)),
    # with deferred normalization.
    m = jnp.max(logits, axis=-1, keepdims=True)    # (BB, TM, 1)
    e = jnp.exp(logits - m)                        # (BB, TM, N)
    denom = jnp.sum(e, axis=-1, keepdims=True)     # (BB, TM, 1)

    # Unnormalized aggregation: canonical (TM, N) x (N, Dv) matmul, bf16 in /
    # f32 accumulate.
    ctx = jnp.einsum('bqk,bkd->bqd',
                     e.astype(jnp.bfloat16), V.astype(jnp.bfloat16),
                     preferred_element_type=jnp.float32)        # (BB, TM, Dv)

    inv = pl.reciprocal(denom, approx=True)        # EUP slot, not VPU divides
    o_ref[...] = (ctx * inv).astype(o_ref.dtype)


def _vmem_limit_bytes():
    """Generation-aware VMEM limit (v5e/v6e: 128 MiB phys, v7x: 64 MiB phys)."""
    try:
        cap = int(pltpu.get_tpu_info().vmem_capacity_bytes)
    except Exception:
        cap = 64 << 20                              # conservative (v7x-sized)
    return int(min(cap * 3 // 4, 100 << 20))


def _choose_blocks(B, M, N, vmem_limit_bytes):
    """Pick (batch block BB, query tile TM) so the softmax chain fits VMEM."""
    lanes = -(-max(N, 1) // 128) * 128
    # ~5 live f32-width copies of each (query-row, N) slab
    # (cross, dist2, logits, e in f32 + bf16 copy of e) -> ~20 B / element.
    row_bytes = lanes * 20
    budget = vmem_limit_bytes // 2                  # rest: double-buffered blocks
    row_cap = max(8, budget // row_bytes)

    if M <= row_cap:
        TM = M                                      # full query axis per tile
    else:
        TM = max(8, (min(row_cap, M) // 8) * 8)     # (8,128)-aligned tile

    BB = 1
    if TM == M:
        # Fuse batches when a single batch tile is tiny (amortize per-step
        # overhead, larger DMAs), but keep >= 2 grid steps when B >= 2 so both
        # v7x TensorCores get work.
        bb_cap = min(B, max(1, row_cap // max(M, 1)))
        if B >= 2:
            bb_cap = min(bb_cap, max(1, B // 2))
        for cand in range(bb_cap, 0, -1):
            if B % cand == 0:
                BB = cand
                break
    return BB, TM


def mads_forward(KEY, VALUE, QUERY, W, *, attn_type='nwd', kernel='gauss'):
    """Forward pass of the `mads` module (adaptive-distance attention)."""
    if attn_type != 'nwd':
        # TODO(synk): 'krig' path (batched torch.linalg.lstsq ordinary-kriging
        # solve) has no clean Pallas equivalent.
        raise NotImplementedError("only attn_type='nwd' is implemented in Pallas")

    B, N, Dk = KEY.shape
    Bq, M, Dq = QUERY.shape
    Bv, Nv, Dv = VALUE.shape
    assert B == Bq == Bv and N == Nv
    assert Dk == Dq, "mads applies the same W (size input_k) to KEY and QUERY"
    assert W.shape == (Dk,)

    vmem_limit = _vmem_limit_bytes()
    BB, TM = _choose_blocks(B, M, N, vmem_limit)
    grid = (B // BB, pl.cdiv(M, TM))                # m is the inner (fast) axis

    kern_fn = functools.partial(_mads_nwd_kernel, kernel=kernel,
                                cast_qk_bf16=(Dk >= 16))

    out = pl.pallas_call(
        kern_fn,
        out_shape=jax.ShapeDtypeStruct((B, M, Dv), jnp.float32),
        grid=grid,
        in_specs=[
            pl.BlockSpec((1, Dk), lambda b, m: (0, 0)),          # W
            pl.BlockSpec((BB, N, Dk), lambda b, m: (b, 0, 0)),   # KEY  (resident over m)
            pl.BlockSpec((BB, N, Dv), lambda b, m: (b, 0, 0)),   # VALUE(resident over m)
            pl.BlockSpec((BB, TM, Dq), lambda b, m: (b, m, 0)),  # QUERY tile
        ],
        out_specs=pl.BlockSpec((BB, TM, Dv), lambda b, m: (b, m, 0)),
        compiler_params=pltpu.CompilerParams(
            dimension_semantics=("parallel", "parallel"),
            vmem_limit_bytes=vmem_limit,
        ),
    )(
        W.reshape(1, Dk).astype(jnp.float32),
        KEY.astype(jnp.float32),
        VALUE.astype(jnp.float32),
        QUERY.astype(jnp.float32),
    )
    return out


def _mads_reference(KEY, VALUE, QUERY, W, kernel='gauss'):
    """Pure-JAX reference mirroring the PyTorch `mads` ('nwd') forward."""
    Ks = KEY * W[None, None, :]
    Qs = QUERY * W[None, None, :]
    diff = Ks[:, :, None, :] - Qs[:, None, :, :]
    dist = jnp.sqrt(jnp.maximum(jnp.sum(diff * diff, axis=-1), 0.0))   # (B, N, M)
    if kernel == 'gauss':
        logits = -(dist ** 2) / 2.0
    else:
        logits = -dist / 2.0
    w = jax.nn.softmax(logits, axis=1)                                  # over keys
    return jnp.einsum('bij,bik->bjk', w, VALUE)                         # (B, M, Dv)


if __name__ == "__main__":
    # Small shapes consistent with the module: batch=2, points=8, features=4.
    B, N, M, D, Dv = 2, 8, 8, 4, 4
    key = jax.random.PRNGKey(0)
    k1, k2, k3 = jax.random.split(key, 3)
    KEY = jax.random.normal(k1, (B, N, D), dtype=jnp.float32)
    QUERY = jax.random.normal(k2, (B, M, D), dtype=jnp.float32)
    VALUE = jax.random.normal(k3, (B, N, Dv), dtype=jnp.float32)

    # Parameter exactly as in mads.__init__: W = ones(input_k).
    W = jnp.ones((D,), dtype=jnp.float32)

    out = mads_forward(KEY, VALUE, QUERY, W, attn_type='nwd', kernel='gauss')
    out = jax.block_until_ready(out)

    ref = _mads_reference(KEY, VALUE, QUERY, W, kernel='gauss')
    assert out.shape == (B, M, Dv)
    # bf16 aggregation matmul + approximate reciprocal => slightly relaxed
    # tolerance vs the pure-f32 reference.
    assert jnp.allclose(out, ref, atol=2e-2, rtol=2e-2), "mismatch vs reference"

    print("KERNEL_OK")
</pallas_src>

<mosaic_0001>
module attributes {stable_mosaic.version = 11 : i64} {
  func.func @_mads_nwd_kernel(%arg0: i32, %arg1: i32, %arg2: memref<1x4xf32, #tpu.memory_space<vmem>>, %arg3: memref<1x8x4xf32, #tpu.memory_space<vmem>>, %arg4: memref<1x8x4xf32, #tpu.memory_space<vmem>>, %arg5: memref<1x8x4xf32, #tpu.memory_space<vmem>>, %arg6: memref<1x8x4xf32, #tpu.memory_space<vmem>>) attributes {dimension_semantics = [#tpu.dimension_semantics<parallel>, #tpu.dimension_semantics<parallel>], iteration_bounds = array<i64: 2, 1>, scalar_prefetch = 0 : i64, scratch_operands = 0 : i64, tpu.core_type = #tpu.core_type<tc>, window_params = [{pipeline_mode = #tpu.pipeline_mode<synchronous>, transform_indices = @transform_0, window_bounds = array<i64: 1, 4>}, {transform_indices = @transform_1, window_bounds = array<i64: 1, 8, 4>}, {transform_indices = @transform_2, window_bounds = array<i64: 1, 8, 4>}, {transform_indices = @transform_3, window_bounds = array<i64: 1, 8, 4>}, {transform_indices = @transform_4, window_bounds = array<i64: 1, 8, 4>}]} {
    %c0 = arith.constant 0 : index
    %c0_0 = arith.constant 0 : index
    %0 = vector.load %arg2[%c0, %c0_0] : memref<1x4xf32, #tpu.memory_space<vmem>>, vector<1x4xf32>
    %1 = vector.shape_cast %0 : vector<1x4xf32> to vector<1x1x4xf32>
    %c0_1 = arith.constant 0 : index
    %c0_2 = arith.constant 0 : index
    %c0_3 = arith.constant 0 : index
    %2 = vector.load %arg3[%c0_1, %c0_2, %c0_3] : memref<1x8x4xf32, #tpu.memory_space<vmem>>, vector<1x8x4xf32>
    %3 = vector.broadcast %1 : vector<1x1x4xf32> to vector<1x8x4xf32>
    %4 = arith.mulf %2, %3 : vector<1x8x4xf32>
    %c0_4 = arith.constant 0 : index
    %c0_5 = arith.constant 0 : index
    %c0_6 = arith.constant 0 : index
    %5 = vector.load %arg5[%c0_4, %c0_5, %c0_6] : memref<1x8x4xf32, #tpu.memory_space<vmem>>, vector<1x8x4xf32>
    %6 = vector.broadcast %1 : vector<1x1x4xf32> to vector<1x8x4xf32>
    %7 = arith.mulf %5, %6 : vector<1x8x4xf32>
    %c0_7 = arith.constant 0 : index
    %c0_8 = arith.constant 0 : index
    %c0_9 = arith.constant 0 : index
    %8 = vector.load %arg4[%c0_7, %c0_8, %c0_9] : memref<1x8x4xf32, #tpu.memory_space<vmem>>, vector<1x8x4xf32>
    %9 = arith.mulf %4, %4 : vector<1x8x4xf32>
    %cst = arith.constant dense<0.000000e+00> : vector<1x8xf32>
    %10 = vector.multi_reduction <add>, %9, %cst [2] : vector<1x8x4xf32> to vector<1x8xf32>
    %11 = vector.shape_cast %10 : vector<1x8xf32> to vector<1x1x8xf32>
    %12 = arith.mulf %7, %7 : vector<1x8x4xf32>
    %cst_10 = arith.constant dense<0.000000e+00> : vector<1x8xf32>
    %13 = vector.multi_reduction <add>, %12, %cst_10 [2] : vector<1x8x4xf32> to vector<1x8xf32>
    %14 = vector.shape_cast %13 : vector<1x8xf32> to vector<1x8x1xf32>
    "tpu.trace_start"() <{level = 10 : i32, message = "bqd,bkd->bqk"}> : () -> ()
    %cst_11 = arith.constant dense<0.000000e+00> : vector<1x8x8xf32>
    %15 = tpu.matmul %7, %4, %cst_11 {dimension_numbers = #tpu.dot_dimension_numbers<[2], [2], [1], [1], [0, 0, 0, 1, 1, 1], [0], [0]>} : vector<1x8x4xf32>, vector<1x8x4xf32>, vector<1x8x8xf32> -> vector<1x8x8xf32>
    "tpu.trace_stop"() : () -> ()
    %16 = vector.broadcast %14 : vector<1x8x1xf32> to vector<1x8x8xf32>
    %17 = vector.broadcast %11 : vector<1x1x8xf32> to vector<1x8x8xf32>
    %18 = arith.addf %16, %17 : vector<1x8x8xf32>
    %cst_12 = arith.constant 2.000000e+00 : f32
    %19 = vector.broadcast %cst_12 : f32 to vector<1x8x8xf32>
    %20 = arith.mulf %19, %15 : vector<1x8x8xf32>
    %21 = arith.subf %18, %20 : vector<1x8x8xf32>
    %cst_13 = arith.constant 0.000000e+00 : f32
    %22 = vector.broadcast %cst_13 : f32 to vector<1x8x8xf32>
    %23 = arith.maximumf %21, %22 : vector<1x8x8xf32>
    %cst_14 = arith.constant -5.000000e-01 : f32
    %24 = vector.broadcast %cst_14 : f32 to vector<1x8x8xf32>
    %25 = arith.mulf %23, %24 : vector<1x8x8xf32>
    %cst_15 = arith.constant dense<0xFF800000> : vector<1x8xf32>
    %26 = vector.multi_reduction <maximumf>, %25, %cst_15 [2] : vector<1x8x8xf32> to vector<1x8xf32>
    %27 = vector.shape_cast %26 : vector<1x8xf32> to vector<1x8x1xf32>
    %28 = vector.broadcast %27 : vector<1x8x1xf32> to vector<1x8x8xf32>
    %29 = arith.subf %25, %28 : vector<1x8x8xf32>
    %30 = math.exp %29 : vector<1x8x8xf32>
    %cst_16 = arith.constant dense<0.000000e+00> : vector<1x8xf32>
    %31 = vector.multi_reduction <add>, %30, %cst_16 [2] : vector<1x8x8xf32> to vector<1x8xf32>
    %32 = vector.shape_cast %31 : vector<1x8xf32> to vector<1x8x1xf32>
    %33 = arith.truncf %30 : vector<1x8x8xf32> to vector<1x8x8xbf16>
    %34 = arith.truncf %8 : vector<1x8x4xf32> to vector<1x8x4xbf16>
    "tpu.trace_start"() <{level = 10 : i32, message = "bqk,bkd->bqd"}> : () -> ()
    %cst_17 = arith.constant dense<0.000000e+00> : vector<1x8x4xf32>
    %35 = tpu.matmul %33, %34, %cst_17 {dimension_numbers = #tpu.dot_dimension_numbers<[2], [1], [1], [2], [0, 0, 0, 1, 1, 2], [0], [0]>} : vector<1x8x8xbf16>, vector<1x8x4xbf16>, vector<1x8x4xf32> -> vector<1x8x4xf32>
    "tpu.trace_stop"() : () -> ()
    %36 = tpu.reciprocal %32 {approx = true} : vector<1x8x1xf32> -> vector<1x8x1xf32>
    %37 = vector.broadcast %36 : vector<1x8x1xf32> to vector<1x8x4xf32>
    %38 = arith.mulf %35, %37 : vector<1x8x4xf32>
    %c0_18 = arith.constant 0 : index
    %c0_19 = arith.constant 0 : index
    %c0_20 = arith.constant 0 : index
    %39 = vector.load %arg6[%c0_18, %c0_19, %c0_20] : memref<1x8x4xf32, #tpu.memory_space<vmem>>, vector<1x8x4xf32>
    tpu.vector_store %arg6[%c0_18, %c0_19, %c0_20], %38 {strides = array<i32>} : memref<1x8x4xf32, #tpu.memory_space<vmem>>, vector<1x8x4xf32>,
    return
  }
  func.func @transform_0(%arg0: i32, %arg1: i32) -> (i32, i32) {
    %c0_i32 = arith.constant 0 : i32
    %c0_i32_0 = arith.constant 0 : i32
    %c0_i32_1 = arith.constant 0 : i32
    return %c0_i32, %c0_i32_0 : i32, i32
  }
  func.func @transform_1(%arg0: i32, %arg1: i32) -> (i32, i32, i32) {
    %c0_i32 = arith.constant 0 : i32
    %c0_i32_0 = arith.constant 0 : i32
    %c0_i32_1 = arith.constant 0 : i32
    return %arg0, %c0_i32, %c0_i32_0 : i32, i32, i32
  }
  func.func @transform_2(%arg0: i32, %arg1: i32) -> (i32, i32, i32) {
    %c0_i32 = arith.constant 0 : i32
    %c0_i32_0 = arith.constant 0 : i32
    %c0_i32_1 = arith.constant 0 : i32
    return %arg0, %c0_i32, %c0_i32_0 : i32, i32, i32
  }
  func.func @transform_3(%arg0: i32, %arg1: i32) -> (i32, i32, i32) {
    %c0_i32 = arith.constant 0 : i32
    %c0_i32_0 = arith.constant 0 : i32
    return %arg0, %arg1, %c0_i32 : i32, i32, i32
  }
  func.func @transform_4(%arg0: i32, %arg1: i32) -> (i32, i32, i32) {
    %c0_i32 = arith.constant 0 : i32
    %c0_i32_0 = arith.constant 0 : i32
    return %arg0, %arg1, %c0_i32 : i32, i32, i32
  }
}

</mosaic_0001>

<bundles_post_ra>
// kernel: tpu_custom_call.1
= control target key start
LH: loop header
LB: loop body
LE: loop exit
PB: predicated region body
PF: predicated region fallthrough
CT: control target
= control target key end

     0   :  { %s652_s15 = smov 0   ;;  %s654_s16 = smov 0   ;;  %s708_s0 = inlined_call_operand.vmem [shape: f32[1,4], index: 0, kind: input, shape index: {}]   ;;  %s709_s1 = inlined_call_operand.vmem [shape: f32[2,8,4], index: 1, kind: input, shape index: {}]   ;;  %s710_s2 = inlined_call_operand.vmem [shape: f32[2,8,4], index: 2, kind: input, shape index: {}]   ;;  %s711_s3 = inlined_call_operand.vmem [shape: f32[2,8,4], index: 3, kind: input, shape index: {}]   ;;  %s712_s4 = inlined_call_operand.vmem [shape: f32[2,8,4], index: 4, kind: output, shape index: {}]  }
   0x1   :  { %s656_s17 = smov 0  }
   0x2 LB: > { %s26_s18 = sadd.s32 1, %s619_s16  ;;  %p545_p0 = scmp.ge.s32.totalorder %s623_s17, 1  ;;  %s623_s17 = sphi %s656_s17, %s14_s17   ;;  %s619_s16 = sphi %s654_s16, %s714_s16   ;;  %s615_s15 = sphi %s652_s15, %s713_s15  }
   0x3   : > { %p28_p1 = scmp.ge.s32.totalorder %s26_s18, 2  ;;  %p198_p2 = scmp.lt.s32.totalorder %s623_s17, 3 }
   0x5   : > { %s716_s18 = smov (%p28_p1, %s26_s18), 0  ;;  %p199_p3 = pnand %p545_p0, %p198_p2 }
   0x6   : > { %p236_p4 = scmp.lt.s32.totalorder (!%p199_p3), %s615_s15, 1 }
   0x7   : > { %202 = sbr.rel (%p199_p3) target bundleno = 580 (0x244), region = 36 }
   0xc   : > { %v625_v0 = vmov 0.0   ;;  %vm626_vm0 = vmmov 0   ;;  %s718_s15 = smov (!%p236_p4, %s615_s15), 1  ;;  %v550_v1 = vld [vmem:[%s708_s0] ss:$0 sm:$0xff]  ;;  %vm272_vm1 = vcmask 31744   ;;  %v357_v10 = vlaneseq }
   0xd   : > { %560 = vmatprep.subr.mxu0 %v625_v0  ;;  %562 = vmatprep.mubr.msk.f32.mxu0 %vm626_vm0, %v625_v0  ;;  %s670_s19 = sshll.u32 %s718_s15, 3  ;;  %vm381_vm2 = vcmask 64512   ;;  %vm396_vm3 = vcmask 1043456  }
   0xe   : > { %565 = vmatprep.subr.bf16.mxu1 %v625_v0  ;;  %567 = vmatprep.mubr.msk.bf16.mxu1 %vm626_vm0, %v625_v0  ;;  %s239_s24 = scalar_lea.vmem %s709_s1, %s670_s19  ;;  %s250_s27 = scalar_lea.vmem %s711_s3, %s670_s19  ;;  %v358_v11 = vand.u32 127, %v357_v10  ;;  %v360_v12 = vshrl.u32 %v357_v10, 7 }
   0xf   : > { %v260_v2 = vld [vmem:[%s239_s24] sm:$0xff]  ;;  %s243_s30 = scalar_lea.vmem %s710_s2, %s670_s19  ;;  %s257_s7 = scalar_lea.vmem %s712_s4, %s670_s19 }
  0x10   : > { %v268_v3 = vld [vmem:[%s250_s27] sm:$0xff]  ;;  %v267_v4 = vmul.f32 %v550_v1, %v260_v2  ;;  %v361_v14 = vsub.s32 %v358_v11, %v360_v12 }
  0x11   : > { %v269_v5 = vmul.f32 %v550_v1, %v268_v3  ;;  %v270_v25 = vld [vmem:[%s243_s30] sm:$0xff] }
  0x12   : > { %561 = vmatpush3.xpose.msk.msra.mxu0 %vm272_vm1, %v267_v4  ;;  %v271_v6 = vmul.f32 %v267_v4, %v267_v4  ;;  %v392_v26 = vpack.c.bf16 %v270_v25, %v270_v25 }
  0x13   : > { %v276_v7 = vmul.f32 %v269_v5, %v269_v5 }
  0x14   : > { %v273_v8 = vsel %vm272_vm1, %v271_v6, 0.0  ;;  %v398_v27 = vsel %vm396_vm3, %v392_v26, 0 }
  0x15   : > { %563 = vmatmul.mubr.msk.f32.vlgmr.msra.gmra.mxu0 %vm272_vm1, %v269_v5  ;;  %274 = vadd.xlane.f32.xlu0 %v273_v8  ;;  %v277_v9 = vsel %vm272_vm1, %v276_v7, 0.0 }
  0x16   : > { %566 = vmatpush3.bf16.msra.mxu1 %v398_v27 }
  0x19   : > { %278 = vadd.xlane.f32.xlu0 %v277_v9 }
  0x9e   : > { %v275_v13 = vpop.xlane.xlu0 %274 }
  0x9f   : > { %v362_v15 = vrot.slane %v275_v13, %v361_v14 }
  0xa2   : > { %v279_v16 = vpop.xlane.xlu0 %278 }
  0xa3   : > { %v376_v18 = vadd.f32 %v362_v15, %v279_v16 }
  0xd5   : > { %v352_v17 = vpop.f32.mrf.mxu0 }
  0xd6   : > { %v377_v19 = vmul.f32 2.0, %v352_v17 }
  0xd7   : > { %v564_v20 = vpop.f32.mrf.mxu0 }
  0xd8   : > { %v378_v21 = vsub.f32 %v376_v18, %v377_v19 }
  0xda   : > { %v379_v22 = vmax.f32 %v378_v21, 0.0 }
  0xdc   : > { %v380_v23 = vmul.f32 -0.5, %v379_v22 }
  0xde   : > { %v382_v24 = vsel %vm381_vm2, %v380_v23, -inf }
  0xdf   : > { %383 = vmax.xlane.f32.xlu1 %v382_v24 }
 0x168   : > { %v384_v28 = vpop.xlane.xlu1 %383 }
 0x169   : > { %v385_v29 = vsub.f32 %v380_v23, %v384_v28 }
 0x16b   : > { %v386_v30 = vmul.f32 1.442695, %v385_v29 }
 0x16d   : > { %597 = vpow2.f32 %v386_v30 }
 0x17a   : > { %v598_v31 = vpop.eup %597 }
 0x17b   : > { %v388_v32 = vsel %vm381_vm2, %v598_v31, 0.0  ;;  %v391_v33 = vpack.c.bf16 %v598_v31, %v598_v31 }
 0x17c   : > { %389 = vadd.xlane.f32.xlu1 %v388_v32 }
 0x17d   : > { %568 = vmatmul.mubr.msk.bf16.vlgmr.msra.gmra.mxu1 %vm381_vm2, %v391_v33 }
 0x205   : > { %v390_v34 = vpop.xlane.xlu1 %389 }
 0x206   : > { %599 = vrcp.f32 %v390_v34 }
 0x213   : > { %v600_v35 = vpop.eup %599 }
 0x23d   : > { %v434_v36 = vpop.f32.mrf.mxu1 }
 0x23e   : > { %v441_v37 = vmul.f32 %v600_v35, %v434_v36 }
 0x23f   : > { %v569_v38 = vpop.f32.mrf.mxu1 }
 0x240   : > { %442 = vst.msk [vmem:[%s257_s7] sm:$0xff] %vm272_vm1, %v441_v37 }
 0x241   : > { %v437_v39 = vpop.f32.mrf.mxu1 }
 0x243   : > { %v570_v40 = vpop.f32.mrf.mxu1 }
 0x244 PF: > { %s14_s17 = sadd.s32 1, %s623_s17   ;;  %s713_s15 = smov %s619_s16 }
 0x245   : > { %p11_p5 = scmp.ge.s32.totalorder %s14_s17, 4   ;;  %s714_s16 = smov %s716_s18 }
 0x247   :  { %13 = sbr.rel (!%p11_p5) target bundleno = 2 (0x2), region = 72 }

</bundles_post_ra>
